<compile_context>
chip_gen: v6e
topology: v6e:2x2x1
jax: 0.10.0
libtpu: 0.0.40
codegen_flags: <defaults>
</compile_context>

<pallas_src>
import jax
import jax.numpy as jnp
from jax.experimental import pallas as pl
from jax.experimental.pallas import tpu as pltpu

# ----------------------------- problem sizes -------------------------------
B = 8              # batch
C = 4              # image channels (NCHW)
H = W = 16         # spatial
FEATURE_DIM = 32   # backbone output feature dim
META_DIM = 8       # meta_feature_dim
HIDDEN = 4096      # midd layer width (as in the module; only used offline)
NUM_CLASSES = 10
N_PAD = 128        # lane-dense padded output width
BN_EPS = 1e-5


# ------------------------------- kernel ------------------------------------
def metamodel_kernel(x_ref, meta_ref, w_img_ref, w_meta_ref, bias_ref, out_ref):
    """out = sum_hw(x) @ W_img + meta @ W_meta + bias (all folds done offline)."""
    # Backbone stand-in tail: global average pool. The 1/(H*W) factor is folded
    # into w_img, so a plain spatial sum suffices here.
    pooled = jnp.sum(x_ref[...], axis=-1)                        # (B, C)

    out = (jnp.dot(pooled, w_img_ref[...], preferred_element_type=jnp.float32)
           + jnp.dot(meta_ref[...], w_meta_ref[...], preferred_element_type=jnp.float32)
           + bias_ref[...])
    out_ref[...] = out.astype(out_ref.dtype)                     # (B, 128) lane-dense


# ------------------------------- wrapper ------------------------------------
def metamodel_forward(x, meta_feature, folded):
    """x: (B, C, H, W) float32 NCHW; meta_feature: (B, META_DIM) float32."""
    b = x.shape[0]
    x3 = x.reshape(b, C, H * W)        # free metadata reshape; GAP happens in-kernel
    vmem = pl.BlockSpec(memory_space=pltpu.MemorySpace.VMEM)
    out_padded = pl.pallas_call(
        metamodel_kernel,
        out_shape=jax.ShapeDtypeStruct((b, N_PAD), jnp.float32),
        in_specs=[vmem] * 5,
        out_specs=vmem,
    )(x3, meta_feature, folded["w_img"], folded["w_meta"], folded["bias"])
    return out_padded[:, :NUM_CLASSES]


# ------------------------- deterministic parameters --------------------------
def init_params(key):
    ks = jax.random.split(key, 8)
    # TODO(synk): the real timm backbone (arbitrary `model_arch`) is replaced by
    # a GAP + Linear(C, FEATURE_DIM) stand-in; weights below are synthetic.
    wb = jax.random.normal(ks[0], (C, FEATURE_DIM), jnp.float32) * 0.1
    bb = jax.random.normal(ks[1], (1, FEATURE_DIM), jnp.float32) * 0.01

    # metaBN = nn.BatchNorm1d(META_DIM), eval-mode statistics
    gamma = jnp.ones((1, META_DIM), jnp.float32) * 1.1
    beta = jnp.full((1, META_DIM), 0.05, jnp.float32)
    mean = jnp.linspace(-0.2, 0.2, META_DIM, dtype=jnp.float32).reshape(1, META_DIM)
    var = jnp.linspace(0.8, 1.2, META_DIM, dtype=jnp.float32).reshape(1, META_DIM)

    # midd = nn.Linear(FEATURE_DIM + META_DIM, HIDDEN), split row-wise
    w1 = jax.random.normal(ks[2], (FEATURE_DIM + META_DIM, HIDDEN), jnp.float32) * 0.02
    b1 = jax.random.normal(ks[3], (1, HIDDEN), jnp.float32) * 0.01
    w1r, w1m = w1[:FEATURE_DIM], w1[FEATURE_DIM:]

    # head = nn.Linear(HIDDEN, NUM_CLASSES)
    w2 = jax.random.normal(ks[4], (HIDDEN, NUM_CLASSES), jnp.float32) * 0.02
    b2 = jax.random.normal(ks[5], (1, NUM_CLASSES), jnp.float32) * 0.01

    return dict(wb=wb, bb=bb, gamma=gamma, beta=beta, mean=mean, var=var,
                w1r=w1r, w1m=w1m, b1=b1, w2=w2, b2=b2)


def fold_params(p):
    """Offline inference-time fold of the whole MetaModel tail.

    out = pooled @ (wb @ w1r @ w2)                      # image branch
        + meta   @ (diag(s) @ w1m @ w2)                 # meta branch (BN scale)
        + bb @ w1r @ w2 + t @ w1m @ w2 + b1 @ w2 + b2   # fused bias (BN shift)
    with s = gamma * rsqrt(var + eps), t = beta - mean * s.
    The 4096-wide hidden only appears in this contraction, never in the kernel.
    The 1/(H*W) GAP factor is folded into the image weight; all outputs are
    zero-padded from NUM_CLASSES to N_PAD lanes.
    """
    inv_std = jax.lax.rsqrt(p["var"] + BN_EPS)              # (1, META_DIM)
    s = p["gamma"] * inv_std                                # (1, META_DIM)
    t = p["beta"] - p["mean"] * s                           # (1, META_DIM)

    w1r_w2 = p["w1r"] @ p["w2"]                             # (FEATURE_DIM, K)
    w1m_w2 = p["w1m"] @ p["w2"]                             # (META_DIM, K)

    w_img = (p["wb"] @ w1r_w2) / float(H * W)               # (C, K), GAP folded
    w_meta = s.reshape(-1, 1) * w1m_w2                      # (META_DIM, K), BN folded
    bias = p["bb"] @ w1r_w2 + t @ w1m_w2 + p["b1"] @ p["w2"] + p["b2"]   # (1, K)

    pad = ((0, 0), (0, N_PAD - NUM_CLASSES))                # lane-dense output
    return dict(w_img=jnp.pad(w_img, pad),
                w_meta=jnp.pad(w_meta, pad),
                bias=jnp.pad(bias, pad))


# ----------------------------- pure-JAX reference ----------------------------
def reference_forward(x, meta_feature, p):
    """Un-folded reference: GAP backbone tail -> BN -> concat -> midd -> head."""
    pooled = jnp.mean(x, axis=(2, 3))
    res = pooled @ p["wb"] + p["bb"]
    meta_n = (meta_feature - p["mean"]) / jnp.sqrt(p["var"] + BN_EPS) * p["gamma"] + p["beta"]
    outs = jnp.concatenate([res, meta_n], axis=-1)
    w1 = jnp.concatenate([p["w1r"], p["w1m"]], axis=0)
    outs = outs @ w1 + p["b1"]
    outs = outs @ p["w2"] + p["b2"]
    return outs


if __name__ == "__main__":
    key = jax.random.PRNGKey(0)
    kx, kmeta, kparam = jax.random.split(key, 3)

    x = jax.random.normal(kx, (B, C, H, W), jnp.float32)          # NCHW
    meta_feature = jax.random.normal(kmeta, (B, META_DIM), jnp.float32)
    params = init_params(kparam)
    folded = jax.tree_util.tree_map(jax.block_until_ready, fold_params(params))

    out = metamodel_forward(x, meta_feature, folded)
    out = jax.block_until_ready(out)

    ref = reference_forward(x, meta_feature, params)
    assert out.shape == (B, NUM_CLASSES)
    assert jnp.allclose(out, ref, atol=2e-4, rtol=2e-4), "mismatch vs reference"

    print("KERNEL_OK")
</pallas_src>

<mosaic_0001>
module attributes {stable_mosaic.version = 11 : i64} {
  func.func @metamodel_kernel(%arg0: memref<8x4x256xf32, #tpu.memory_space<vmem>>, %arg1: memref<8x8xf32, #tpu.memory_space<vmem>>, %arg2: memref<4x128xf32, #tpu.memory_space<vmem>>, %arg3: memref<8x128xf32, #tpu.memory_space<vmem>>, %arg4: memref<1x128xf32, #tpu.memory_space<vmem>>, %arg5: memref<8x128xf32, #tpu.memory_space<vmem>>) attributes {dimension_semantics = [], scalar_prefetch = 0 : i64, scratch_operands = 0 : i64, tpu.core_type = #tpu.core_type<tc>} {
    %c0 = arith.constant 0 : index
    %c0_0 = arith.constant 0 : index
    %c0_1 = arith.constant 0 : index
    %0 = vector.load %arg0[%c0, %c0_0, %c0_1] : memref<8x4x256xf32, #tpu.memory_space<vmem>>, vector<8x4x256xf32>
    %cst = arith.constant dense<0.000000e+00> : vector<8x4xf32>
    %1 = vector.multi_reduction <add>, %0, %cst [2] : vector<8x4x256xf32> to vector<8x4xf32>
    %c0_2 = arith.constant 0 : index
    %c0_3 = arith.constant 0 : index
    %2 = vector.load %arg2[%c0_2, %c0_3] : memref<4x128xf32, #tpu.memory_space<vmem>>, vector<4x128xf32>
    %cst_4 = arith.constant dense<0.000000e+00> : vector<8x128xf32>
    %3 = tpu.matmul %1, %2, %cst_4 {dimension_numbers = #tpu.dot_dimension_numbers<[1], [0], [0], [1], [0, 0, 1, 1], [], []>} : vector<8x4xf32>, vector<4x128xf32>, vector<8x128xf32> -> vector<8x128xf32>
    %c0_5 = arith.constant 0 : index
    %c0_6 = arith.constant 0 : index
    %4 = vector.load %arg1[%c0_5, %c0_6] : memref<8x8xf32, #tpu.memory_space<vmem>>, vector<8x8xf32>
    %c0_7 = arith.constant 0 : index
    %c0_8 = arith.constant 0 : index
    %5 = vector.load %arg3[%c0_7, %c0_8] : memref<8x128xf32, #tpu.memory_space<vmem>>, vector<8x128xf32>
    %cst_9 = arith.constant dense<0.000000e+00> : vector<8x128xf32>
    %6 = tpu.matmul %4, %5, %cst_9 {dimension_numbers = #tpu.dot_dimension_numbers<[1], [0], [0], [1], [0, 0, 1, 1], [], []>} : vector<8x8xf32>, vector<8x128xf32>, vector<8x128xf32> -> vector<8x128xf32>
    %7 = arith.addf %3, %6 : vector<8x128xf32>
    %c0_10 = arith.constant 0 : index
    %c0_11 = arith.constant 0 : index
    %8 = vector.load %arg4[%c0_10, %c0_11] : memref<1x128xf32, #tpu.memory_space<vmem>>, vector<1x128xf32>
    %9 = vector.broadcast %8 : vector<1x128xf32> to vector<8x128xf32>
    %10 = arith.addf %7, %9 : vector<8x128xf32>
    %c0_12 = arith.constant 0 : index
    %c0_13 = arith.constant 0 : index
    %11 = vector.load %arg5[%c0_12, %c0_13] : memref<8x128xf32, #tpu.memory_space<vmem>>, vector<8x128xf32>
    tpu.vector_store %arg5[%c0_12, %c0_13], %10 {strides = array<i32>} : memref<8x128xf32, #tpu.memory_space<vmem>>, vector<8x128xf32>,
    return
  }
}

</mosaic_0001>

<bundles_post_ra>
// kernel: tpu_custom_call.1
= control target key start
LH: loop header
LB: loop body
LE: loop exit
PB: predicated region body
PF: predicated region fallthrough
CT: control target
= control target key end

     0   :  { %10 = vsyncpa [#allocation3], 0  ;;  %s595_s0 = inlined_call_operand.hbm [shape: f32[8,4,256], index: 0, kind: input, shape index: {}]   ;;  %s596_s1 = inlined_call_operand.hbm [shape: f32[8,8], index: 1, kind: input, shape index: {}]   ;;  %s597_s2 = inlined_call_operand.hbm [shape: f32[4,128], index: 2, kind: input, shape index: {}]   ;;  %s598_s3 = inlined_call_operand.hbm [shape: f32[8,128], index: 3, kind: input, shape index: {}]   ;;  %s599_s4 = inlined_call_operand.vmem [shape: f32[1,128], index: 4, kind: input, shape index: {}]   ;;  %s600_s5 = inlined_call_operand.hbm [shape: f32[8,128], index: 5, kind: output, shape index: {}]  }
   0x1   :  { %11 = vsyncpa [#allocation6], 0 }
   0x2   :  { %12 = vsyncpa [#allocation9], 0 }
   0x3   :  { %13 = vsyncpa [#allocation4], 0  ;;  %s521_s18 = smov [#allocation5]   ;;  %s522_s20 = smov [#allocation2]  }
   0x4   :  { %s32_s19 = sshll.u32 %s521_s18, 4  ;;  %s19_s21 = sshll.u32 %s522_s20, 4  ;;  %s33_s19 = int_to_ptr.vmem [resolvable:$true] %s32_s19  ;;  %s20_s21 = int_to_ptr.vmem [resolvable:$true] %s19_s21 }
   0x5   :  { %s421_s22 = scalar_lea.vmem %s33_s19, 128  ;;  %p426_p1 = scmp.lt.s32.totalorder %s33_s19, %s33_s19 }
   0x6   :  { %p422_p0 = scmp.ne.s32.totalorder %s33_s19, %s421_s22  ;;  %p427_p2 = scmp.lt.s32.totalorder %s421_s22, %s421_s22 }
   0x8   :  { %p428_p3 = por %p427_p2, %p426_p1 }
   0xa   :  { %p429_p4 = pnand %p428_p3, %p422_p0 }
   0xc   :  { %432 = shalt.err (!%p429_p4)
}
   0xd   :  { %35 = dma.hbm_to_vmem [thread:$0]  %s596_s1, 128, %s33_s19, [#allocation6]  }
   0xe   :  { %s441_s25 = scalar_lea.vmem %s20_s21, 1024  ;;  %p446_p6 = scmp.lt.s32.totalorder %s20_s21, %s20_s21 }
   0xf   :  { %p442_p5 = scmp.ne.s32.totalorder %s20_s21, %s441_s25  ;;  %p447_p7 = scmp.lt.s32.totalorder %s441_s25, %s441_s25 }
  0x11   :  { %p448_p8 = por %p447_p7, %p446_p6 }
  0x13   :  { %p449_p9 = pnand %p448_p8, %p442_p5 }
  0x15   :  { %452 = shalt.err (!%p449_p9)
}
  0x16   :  { %s523_s26 = smov 128   ;;  %s524_s27 = smov 8  }
  0x17   :  { %25 = dma.hbm_to_vmem [thread:$0]  %s595_s0, 1024, %s20_s21, [#allocation3], %s523_s26, %s523_s26, %s524_s27  }
  0x18   :  { %s525_s30 = smov [#allocation7]   ;;  %s526_s7 = smov [#allocation8]  }
  0x19   :  { %s42_s6 = sshll.u32 %s525_s30, 4  ;;  %s52_s8 = sshll.u32 %s526_s7, 4  ;;  %s43_s6 = int_to_ptr.vmem [resolvable:$true] %s42_s6  ;;  %s53_s8 = int_to_ptr.vmem [resolvable:$true] %s52_s8 }
  0x1a   :  { %s461_s1 = scalar_lea.vmem %s43_s6, 64  ;;  %p466_p11 = scmp.lt.s32.totalorder %s43_s6, %s43_s6 }
  0x1b   :  { %p462_p10 = scmp.ne.s32.totalorder %s43_s6, %s461_s1  ;;  %p467_p12 = scmp.lt.s32.totalorder %s461_s1, %s461_s1 }
  0x1d   :  { %p468_p13 = por %p467_p12, %p466_p11 }
  0x1f   :  { %p469_p0 = pnand %p468_p13, %p462_p10 }
  0x21   :  { %472 = shalt.err (!%p469_p0)
}
  0x22   :  { %45 = dma.hbm_to_vmem [thread:$0]  %s597_s2, 64, %s43_s6, [#allocation6]  }
  0x23   :  { %s481_s11 = scalar_lea.vmem %s53_s8, 128  ;;  %p486_p2 = scmp.lt.s32.totalorder %s53_s8, %s53_s8 }
  0x24   :  { %p482_p1 = scmp.ne.s32.totalorder %s53_s8, %s481_s11  ;;  %p487_p3 = scmp.lt.s32.totalorder %s481_s11, %s481_s11 }
  0x26   :  { %p488_p4 = por %p487_p3, %p486_p2 }
  0x28   :  { %p489_p5 = pnand %p488_p4, %p482_p1 }
  0x2a   :  { %492 = shalt.err (!%p489_p5)
}
  0x2b   :  { %55 = dma.hbm_to_vmem [thread:$0]  %s598_s3, 128, %s53_s8, [#allocation9]  }
  0x2c   :  { %513 = dma.done.wait [#allocation3], 1024  }
  0x2d   :  { %514 = vsyncadd [#allocation3], 4294966272 }
  0x2e   :  { %515 = dma.done.wait [#allocation6], 192  }
  0x2f   :  { %516 = vsyncadd [#allocation6], 4294967104 }
  0x30   :  { %517 = dma.done.wait [#allocation9], 128  }
  0x31   :  { %518 = vsyncadd [#allocation9], 4294967168  ;;  %vm102_vm0 = vcmask 1043456   ;;  %v70_v0 = vld [vmem:[#allocation2] sm:$0xff]  ;;  %v72_v1 = vld [vmem:[#allocation2 + $0x10] sm:$0xff]  ;;  %v527_v40 = vmov 0.0   ;;  %v228_v44 = vlaneseq }
  0x32   :  { %v71_v2 = vld [vmem:[#allocation2 + $0x8] sm:$0xff]  ;;  %v86_v3 = vcombine.high %v70_v0, %v70_v0  ;;  %v103_v4 = vsel %vm102_vm0, %v70_v0, 0.0  ;;  %v88_v5 = vcombine.high %v72_v1, %v72_v1  ;;  %v113_v6 = vsel %vm102_vm0, %v72_v1, 0.0  ;;  %v73_v7 = vld [vmem:[#allocation2 + $0x18] sm:$0xff]  ;;  %v74_v8 = vld [vmem:[#allocation2 + $0x20] sm:$0xff]  ;;  %386 = vmatprep.subr.mxu0 %v527_v40  ;;  %391 = vmatprep.subr.mxu1 %v527_v40  ;;  %s529_s13 = smov [#allocation10]  }
  0x33   :  { %v87_v9 = vcombine.high %v71_v2, %v71_v2  ;;  %v108_v10 = vsel %vm102_vm0, %v71_v2, 0.0  ;;  %v89_v11 = vcombine.high %v73_v7, %v73_v7  ;;  %v75_v12 = vld [vmem:[#allocation2 + $0x28] sm:$0xff]  ;;  %v118_v15 = vsel %vm102_vm0, %v73_v7, 0.0  ;;  %v76_v21 = vld [vmem:[#allocation2 + $0x30] sm:$0xff]  ;;  %v77_v22 = vld [vmem:[#allocation2 + $0x38] sm:$0xff]  ;;  %s367_s14 = sshll.u32 %s529_s13, 4  ;;  %s368_s14 = int_to_ptr.vmem [resolvable:$true] %s367_s14 }
  0x34   :  { %v104_v13 = vsel %vm102_vm0, %v86_v3, 0.0  ;;  %v114_v14 = vsel %vm102_vm0, %v88_v5, 0.0  ;;  %v90_v16 = vcombine.high %v74_v8, %v74_v8  ;;  %v91_v23 = vcombine.high %v75_v12, %v75_v12  ;;  %v145_v41 = vld [vmem:[#allocation8] sm:$0xff]  ;;  %v144_v42 = vld [vmem:[#allocation5] sm:$0xff]  ;;  %v143_v43 = vld [vmem:[#allocation7] sm:$0xf]  ;;  %p498_p7 = scmp.lt.s32.totalorder %s368_s14, %s368_s14 }
  0x35   :  { %v105_v17 = vadd.f32 %v104_v13, %v103_v4  ;;  %v115_v18 = vadd.f32 %v114_v14, %v113_v6  ;;  %v109_v19 = vsel %vm102_vm0, %v87_v9, 0.0  ;;  %v119_v20 = vsel %vm102_vm0, %v89_v11, 0.0  ;;  %387 = vmatpush3.msra.mxu0 %v145_v41  ;;  %392 = vmatpush3.msk.msra.mxu1 %vm102_vm0, %v143_v43  ;;  %s493_s15 = scalar_lea.vmem %s368_s14, 128 }
  0x36   :  { %v110_v24 = vadd.f32 %v109_v19, %v108_v10  ;;  %v120_v25 = vadd.f32 %v119_v20, %v118_v15  ;;  %v123_v26 = vsel %vm102_vm0, %v74_v8, 0.0  ;;  %v124_v27 = vsel %vm102_vm0, %v90_v16, 0.0  ;;  %v381_v10 = vld [vmem:[%s599_s4] ss:$0 sm:$0xff]  ;;  %p494_p6 = scmp.ne.s32.totalorder %s368_s14, %s493_s15  ;;  %p499_p8 = scmp.lt.s32.totalorder %s493_s15, %s493_s15 }
  0x37   :  { %106 = vadd.xlane.f32.xlu0 %v105_v17  ;;  %116 = vadd.xlane.f32.xlu1 %v115_v18  ;;  %v128_v28 = vsel %vm102_vm0, %v75_v12, 0.0  ;;  %v129_v29 = vsel %vm102_vm0, %v91_v23, 0.0  ;;  %v92_v30 = vcombine.high %v76_v21, %v76_v21  ;;  %v93_v31 = vcombine.high %v77_v22, %v77_v22 }
  0x38   :  { %v125_v32 = vadd.f32 %v124_v27, %v123_v26  ;;  %v130_v33 = vadd.f32 %v129_v29, %v128_v28  ;;  %v133_v34 = vsel %vm102_vm0, %v76_v21, 0.0  ;;  %v138_v36 = vsel %vm102_vm0, %v77_v22, 0.0  ;;  %p500_p9 = por %p499_p8, %p498_p7 }
  0x39   :  { %v134_v35 = vsel %vm102_vm0, %v92_v30, 0.0  ;;  %v139_v37 = vsel %vm102_vm0, %v93_v31, 0.0  ;;  %vm528_vm1 = vmmov 0   ;;  %vm146_vm2 = vcmask 64512  }
  0x3a   :  { %v135_v38 = vadd.f32 %v134_v35, %v133_v34  ;;  %v140_v39 = vadd.f32 %v139_v37, %v138_v36  ;;  %388 = vmatprep.mubr.msk.f32.mxu0 %vm528_vm1, %v527_v40  ;;  %393 = vmatprep.mubr.msk.f32.mxu1 %vm528_vm1, %v527_v40  ;;  %v229_v45 = vand.u32 127, %v228_v44  ;;  %v231_v46 = vshrl.u32 %v228_v44, 7  ;;  %p501_p10 = pnand %p500_p9, %p494_p6 }
  0x3b   :  { %111 = vadd.xlane.f32.xlu0 %v110_v24  ;;  %121 = vadd.xlane.f32.xlu1 %v120_v25  ;;  %vm262_vm3 = vcmask 1041409   ;;  %vm264_vm4 = vcmask 1042434   ;;  %vm266_vm5 = vcmask 1043459   ;;  %vm268_vm6 = vcmask 1044484  }
  0x3c   :  { %389 = vmatmul.mubr.msk.f32.vlgmr.msra.gmra.mxu0 %vm146_vm2, %v144_v42  ;;  %v232_v49 = vsub.s32 %v229_v45, %v231_v46  ;;  %vm270_vm7 = vcmask 1045509   ;;  %vm272_vm8 = vcmask 1046534   ;;  %vm274_vm9 = vcmask 1047559  }
  0x3d   :  { %vm276_vm10 = vcmask 31744  }
  0x3f   :  { %126 = vadd.xlane.f32.xlu0 %v125_v32  ;;  %131 = vadd.xlane.f32.xlu1 %v130_v33 }
  0x43   :  { %136 = vadd.xlane.f32.xlu0 %v135_v38  ;;  %141 = vadd.xlane.f32.xlu1 %v140_v39 }
  0xc0   :  { %v107_v47 = vpop.xlane.xlu0 %106  ;;  %v117_v48 = vpop.xlane.xlu1 %116 }
  0xc1   :  { %v233_v52 = vrot.slane %v107_v47, %v232_v49  ;;  %v241_v55 = vrot.slane %v117_v48, %v232_v49 }
  0xc4   :  { %v112_v50 = vpop.xlane.xlu0 %111  ;;  %v122_v51 = vpop.xlane.xlu1 %121 }
  0xc5   :  { %v237_v53 = vrot.slane %v112_v50, %v232_v49  ;;  %v245_v54 = vrot.slane %v122_v51, %v232_v49 }
  0xc7   :  { %v263_v56 = vsel %vm262_vm3, %v237_v53, %v233_v52 }
  0xc8   :  { %v265_v57 = vsel %vm264_vm4, %v241_v55, %v263_v56  ;;  %v127_v58 = vpop.xlane.xlu0 %126  ;;  %v132_v59 = vpop.xlane.xlu1 %131 }
  0xc9   :  { %v267_v60 = vsel %vm266_vm5, %v245_v54, %v265_v57  ;;  %v249_v61 = vrot.slane %v127_v58, %v232_v49  ;;  %v253_v62 = vrot.slane %v132_v59, %v232_v49 }
  0xcb   :  { %v269_v63 = vsel %vm268_vm6, %v249_v61, %v267_v60 }
  0xcc   :  { %v137_v0 = vpop.xlane.xlu0 %136  ;;  %v142_v1 = vpop.xlane.xlu1 %141  ;;  %v271_v4 = vsel %vm270_vm7, %v253_v62, %v269_v63 }
  0xcd   :  { %v257_v2 = vrot.slane %v137_v0, %v232_v49  ;;  %v261_v3 = vrot.slane %v142_v1, %v232_v49 }
  0xcf   :  { %v273_v5 = vsel %vm272_vm8, %v257_v2, %v271_v4 }
  0xd0   :  { %v275_v6 = vsel %vm274_vm9, %v261_v3, %v273_v5 }
  0xd1   :  { %394 = vmatmul.mubr.msk.f32.vlgmr.msra.gmra.mxu1 %vm276_vm10, %v275_v6 }
  0xfc   :  { %v216_v7 = vpop.f32.mrf.mxu0 }
  0xfe   :  { %v390_v8 = vpop.f32.mrf.mxu0 }
 0x191   :  { %v348_v9 = vpop.f32.mrf.mxu1 }
 0x192   :  { %v349_v11 = vadd.f32 %v348_v9, %v216_v7 }
 0x193   :  { %v395_v12 = vpop.f32.mrf.mxu1 }
 0x194   :  { %v359_v13 = vadd.f32 %v381_v10, %v349_v11 }
 0x196   :  { %360 = vst [vmem:[#allocation10] sm:$0xff] %v359_v13 }
 0x197   :  { %504 = shalt.err (!%p501_p10)
}
 0x198   :  { %370 = dma.vmem_to_hbm [thread:$0]  %s368_s14, 128, %s600_s5, [#allocation4]  }
 0x199   :  { %519 = dma.done.wait [#allocation4], 128  }
 0x19a   :  { %520 = vsyncadd [#allocation4], 4294967168 }
 0x19b   :  { %374 = vsyncpa [#allocation3], 1 }
 0x19c   :  { %375 = vsyncpa [#allocation6], 1 }
 0x19d   :  { %376 = vsyncpa [#allocation9], 1 }
 0x19e   :  { %377 = vsyncpa [#allocation4], 1 }

</bundles_post_ra>
